<compile_context>
chip_gen: v7x
topology: tpu7x:2x2x1
jax: 0.10.0
libtpu: 0.0.40
codegen_flags: <defaults>
</compile_context>

<pallas_src>
import functools

import jax
import jax.numpy as jnp
from jax.experimental import pallas as pl
from jax.experimental.pallas import tpu as pltpu


def _vmem_capacity_bytes():
    """Best-effort per-core VMEM capacity; conservative fallback (v7x = 64 MiB/TC)."""
    try:
        info = pltpu.get_tpu_info()
        cap = int(getattr(info, "vmem_capacity_bytes", 0) or 0)
        if cap > 0:
            return cap
    except Exception:
        pass
    return 64 * 1024 * 1024


def _choose_pack(n, d, max_p=16):
    """Largest p <= max_p dividing n; prefer p with (p*d) % 128 == 0 (lane-dense rows)."""
    best_p, best_aligned = 1, (d % 128 == 0)
    for p in range(2, max_p + 1):
        if n % p:
            continue
        aligned = ((p * d) % 128 == 0)
        if (aligned, p) > (best_aligned, best_p):
            best_p, best_aligned = p, aligned
    return best_p


def _myloss_kernel(sel_ref, a_ref, b_ref, l_ref, out_ref, *,
                   n_rows, pack_p, has_tail):
    i = pl.program_id(0)
    tn = a_ref.shape[0]

    a = a_ref[...].astype(jnp.float32)        # (tn, W)
    b = b_ref[...].astype(jnp.float32)        # (tn, W)
    lbl = l_ref[...]                          # (tn, P) f32

    diff = a - b
    sq = diff * diff

    if pack_p == 1:
        # Plain per-row reduction over the feature axis.
        dist = jnp.sum(sq, axis=1, keepdims=True)                 # (tn, 1)
    else:
        # Lane-dense packed layout: each physical row holds pack_p original
        # rows of D features.  Recover per-original-row sums on the (otherwise
        # idle) MXU with a block-diagonal 0/1 selector (loop-invariant input).
        dist = jnp.dot(sq, sel_ref[...],
                       precision=jax.lax.Precision.HIGHEST,
                       preferred_element_type=jnp.float32)        # (tn, P)

    eps = jnp.float32(1e-9)
    margin = jnp.float32(0.5)
    hinge = jnp.maximum(margin - jnp.sqrt(dist + eps), jnp.float32(0.0))
    cost = jnp.float32(0.5) * (lbl * dist
                               + (jnp.float32(1.0) - lbl) * (hinge * hinge))

    def _write(c):
        # One lane-dense (8,128) block per tile; all entries hold the same
        # per-tile partial sum.  The wrapper reads [:, 0, 0].
        out_ref[...] = jnp.broadcast_to(jnp.sum(c), out_ref.shape)

    if not has_tail:
        _write(cost)
    else:
        last = pl.num_programs(0) - 1

        @pl.when(i != last)
        def _interior():
            _write(cost)

        @pl.when(i == last)
        def _tail():
            # Mask padded tail rows (undefined data in the out-of-bounds part
            # of the last block); mask is applied BEFORE the sum, so NaN/Inf
            # garbage is neutralized by the select.
            row_ids = i * tn + jax.lax.broadcasted_iota(jnp.int32, (tn, 1), 0)
            _write(jnp.where(row_ids < n_rows, cost, jnp.float32(0.0)))


def myloss(predA, predB, label, *, rows_per_tile=None):
    """Contrastive loss (mean). predA, predB: (N, D); label: (N,) or (N, 1).

    Inputs may be f32 or bf16; all math is performed in f32 inside the kernel.
    """
    N, D = predA.shape
    label_f = jnp.asarray(label, jnp.float32).reshape(N)

    # Fold P original rows into one physical row (free row-major reshape).
    P = _choose_pack(N, D)
    W = P * D
    n_rows = N // P

    A = predA.reshape(n_rows, W)
    B = predB.reshape(n_rows, W)
    L = label_f.reshape(n_rows, P)

    if P > 1:
        krow = jnp.arange(W, dtype=jnp.int32)[:, None]       # (W, 1)
        jcol = jnp.arange(P, dtype=jnp.int32)[None, :]       # (1, P)
        sel = (krow // D == jcol).astype(jnp.float32)        # (W, P) block-diagonal
    else:
        sel = jnp.ones((W, 1), jnp.float32)                  # unused by the kernel

    itemsize = jnp.dtype(predA.dtype).itemsize
    sub = max(8, 32 // itemsize)     # sublane multiple: f32->8, bf16->16, int8->32

    # Explicit scoped-VMEM limit avoids the default cliff (16 MiB v5e / 32 MiB
    # v6e,v7x) and adapts to each generation's physical VMEM.
    vmem_limit = min(int(_vmem_capacity_bytes() * 0.65), 100 * 1024 * 1024)

    if rows_per_tile is None:
        # Budget model: 2 inputs x 2 pipeline buffers (input dtype) plus ~3
        # tile-sized f32 temporaries (casts / diff / sq), within 80% of the
        # scoped limit.  No artificial row cap — size purely by bytes.
        bytes_per_row = W * (4 * itemsize + 3 * 4)
        rows_per_tile = (int(0.8 * vmem_limit) // bytes_per_row) // sub * sub
        rows_per_tile = max(sub, rows_per_tile)
    else:
        rows_per_tile = max(sub, (rows_per_tile // sub) * sub)

    tn = n_rows if n_rows <= rows_per_tile else rows_per_tile
    grid_n = pl.cdiv(n_rows, tn)
    has_tail = (n_rows % tn) != 0

    kernel = functools.partial(_myloss_kernel,
                               n_rows=n_rows, pack_p=P, has_tail=has_tail)

    partials = pl.pallas_call(
        kernel,
        out_shape=jax.ShapeDtypeStruct((grid_n, 8, 128), jnp.float32),
        grid=(grid_n,),
        in_specs=[
            pl.BlockSpec((W, P), lambda i: (0, 0)),      # selector (loop-invariant)
            pl.BlockSpec((tn, W), lambda i: (i, 0)),     # predA
            pl.BlockSpec((tn, W), lambda i: (i, 0)),     # predB
            pl.BlockSpec((tn, P), lambda i: (i, 0)),     # label
        ],
        out_specs=pl.BlockSpec((1, 8, 128), lambda i: (i, 0, 0)),
        compiler_params=pltpu.CompilerParams(
            dimension_semantics=("parallel",),           # independent per-tile partials
            vmem_limit_bytes=vmem_limit),
    )(sel, A, B, L)

    # Final cross-tile reduction and mean in the wrapper (keeps the grid axis
    # fully parallel; no carried accumulator in the kernel).
    return jnp.sum(partials[:, 0, 0]) / jnp.float32(N)


def myloss_ref(predA, predB, label):
    """Pure-JAX reference mirroring the PyTorch forward exactly."""
    eps = 1e-9
    margin = 0.5
    a = predA.astype(jnp.float32)
    b = predB.astype(jnp.float32)
    distances = jnp.sum((a - b) ** 2, axis=1)                    # (N,)
    lbl = jnp.asarray(label, jnp.float32).squeeze()              # (N,)
    hinge = jax.nn.relu(margin - jnp.sqrt(distances + eps)) ** 2
    cost = 0.5 * (lbl * distances + (1.0 - lbl) * hinge)
    return jnp.mean(cost)


if __name__ == "__main__":
    key = jax.random.PRNGKey(0)
    keys = jax.random.split(key, 12)

    # Case 1: small D -> packed lane-dense path (P=8, W=256), single tile.
    N1, D1 = 8, 32
    a1 = jax.random.normal(keys[0], (N1, D1), dtype=jnp.float32)
    b1 = jax.random.normal(keys[1], (N1, D1), dtype=jnp.float32)
    l1 = jax.random.bernoulli(keys[2], 0.5, (N1, 1)).astype(jnp.float32)
    out1 = jax.block_until_ready(myloss(a1, b1, l1))
    ref1 = jax.block_until_ready(myloss_ref(a1, b1, l1))
    assert jnp.allclose(out1, ref1, rtol=1e-4, atol=1e-5), (out1, ref1)

    # Case 2: prime N (no packing, P=1), multi-tile with a masked tail.
    N2, D2 = 37, 256
    a2 = jax.random.normal(keys[3], (N2, D2), dtype=jnp.float32)
    b2 = jax.random.normal(keys[4], (N2, D2), dtype=jnp.float32)
    l2 = jax.random.bernoulli(keys[5], 0.5, (N2, 1)).astype(jnp.float32)
    out2 = jax.block_until_ready(myloss(a2, b2, l2, rows_per_tile=8))
    ref2 = jax.block_until_ready(myloss_ref(a2, b2, l2))
    assert jnp.allclose(out2, ref2, rtol=1e-4, atol=1e-5), (out2, ref2)

    # Case 3: packed (P=4, W=128), multi-tile, masked tail, per-tile partials.
    N3, D3 = 100, 32
    a3 = jax.random.normal(keys[6], (N3, D3), dtype=jnp.float32)
    b3 = jax.random.normal(keys[7], (N3, D3), dtype=jnp.float32)
    l3 = jax.random.bernoulli(keys[8], 0.5, (N3,)).astype(jnp.float32)
    out3 = jax.block_until_ready(myloss(a3, b3, l3, rows_per_tile=8))
    ref3 = jax.block_until_ready(myloss_ref(a3, b3, l3))
    assert jnp.allclose(out3, ref3, rtol=1e-4, atol=1e-5), (out3, ref3)

    # Case 4: bf16 inputs (math stays f32 inside the kernel), packed P=12.
    N4, D4 = 24, 64
    a4 = jax.random.normal(keys[9], (N4, D4), dtype=jnp.bfloat16)
    b4 = jax.random.normal(keys[10], (N4, D4), dtype=jnp.bfloat16)
    l4 = jax.random.bernoulli(keys[11], 0.5, (N4, 1)).astype(jnp.float32)
    out4 = jax.block_until_ready(myloss(a4, b4, l4))
    ref4 = jax.block_until_ready(myloss_ref(a4, b4, l4))
    assert jnp.allclose(out4, ref4, rtol=1e-4, atol=1e-5), (out4, ref4)

    print("KERNEL_OK")
</pallas_src>

<mosaic_0001>
module attributes {stable_mosaic.version = 11 : i64} {
  func.func @_myloss_kernel(%arg0: i32, %arg1: memref<256x8xf32, #tpu.memory_space<vmem>>, %arg2: memref<1x256xf32, #tpu.memory_space<vmem>>, %arg3: memref<1x256xf32, #tpu.memory_space<vmem>>, %arg4: memref<1x8xf32, #tpu.memory_space<vmem>>, %arg5: memref<1x8x128xf32, #tpu.memory_space<vmem>>) attributes {dimension_semantics = [#tpu.dimension_semantics<parallel>], iteration_bounds = array<i64: 1>, scalar_prefetch = 0 : i64, scratch_operands = 0 : i64, tpu.core_type = #tpu.core_type<tc>, window_params = [{pipeline_mode = #tpu.pipeline_mode<synchronous>, transform_indices = @transform_0, window_bounds = array<i64: 256, 8>}, {transform_indices = @transform_1, window_bounds = array<i64: 1, 256>}, {transform_indices = @transform_2, window_bounds = array<i64: 1, 256>}, {transform_indices = @transform_3, window_bounds = array<i64: 1, 8>}, {transform_indices = @transform_4, window_bounds = array<i64: 1, 8, 128>}]} {
    %c0 = arith.constant 0 : index
    %c0_0 = arith.constant 0 : index
    %0 = vector.load %arg2[%c0, %c0_0] : memref<1x256xf32, #tpu.memory_space<vmem>>, vector<1x256xf32>
    %c0_1 = arith.constant 0 : index
    %c0_2 = arith.constant 0 : index
    %1 = vector.load %arg3[%c0_1, %c0_2] : memref<1x256xf32, #tpu.memory_space<vmem>>, vector<1x256xf32>
    %c0_3 = arith.constant 0 : index
    %c0_4 = arith.constant 0 : index
    %2 = vector.load %arg4[%c0_3, %c0_4] : memref<1x8xf32, #tpu.memory_space<vmem>>, vector<1x8xf32>
    %3 = arith.subf %0, %1 : vector<1x256xf32>
    %4 = arith.mulf %3, %3 : vector<1x256xf32>
    %c0_5 = arith.constant 0 : index
    %c0_6 = arith.constant 0 : index
    %5 = vector.load %arg1[%c0_5, %c0_6] : memref<256x8xf32, #tpu.memory_space<vmem>>, vector<256x8xf32>
    %cst = arith.constant dense<0.000000e+00> : vector<1x8xf32>
    %6 = tpu.matmul %4, %5, %cst {dimension_numbers = #tpu.dot_dimension_numbers<[1], [0], [0], [1], [0, 0, 1, 1], [], []>, precision = #tpu.contract_precision<fp32>} : vector<1x256xf32>, vector<256x8xf32>, vector<1x8xf32> -> vector<1x8xf32>
    %cst_7 = arith.constant 9.99999971E-10 : f32
    %7 = vector.broadcast %cst_7 : f32 to vector<1x8xf32>
    %8 = arith.addf %6, %7 : vector<1x8xf32>
    %9 = math.sqrt %8 : vector<1x8xf32>
    %cst_8 = arith.constant 5.000000e-01 : f32
    %10 = vector.broadcast %cst_8 : f32 to vector<1x8xf32>
    %11 = arith.subf %10, %9 : vector<1x8xf32>
    %cst_9 = arith.constant 0.000000e+00 : f32
    %12 = vector.broadcast %cst_9 : f32 to vector<1x8xf32>
    %13 = arith.maximumf %11, %12 : vector<1x8xf32>
    %14 = arith.mulf %2, %6 : vector<1x8xf32>
    %cst_10 = arith.constant 1.000000e+00 : f32
    %15 = vector.broadcast %cst_10 : f32 to vector<1x8xf32>
    %16 = arith.subf %15, %2 : vector<1x8xf32>
    %17 = arith.mulf %13, %13 : vector<1x8xf32>
    %18 = arith.mulf %16, %17 : vector<1x8xf32>
    %19 = arith.addf %14, %18 : vector<1x8xf32>
    %cst_11 = arith.constant 5.000000e-01 : f32
    %20 = vector.broadcast %cst_11 : f32 to vector<1x8xf32>
    %21 = arith.mulf %20, %19 : vector<1x8xf32>
    %22 = vector.shape_cast %21 : vector<1x8xf32> to vector<1x1x8xf32>
    %cst_12 = arith.constant dense<0.000000e+00> : vector<1xf32>
    %23 = vector.multi_reduction <add>, %22, %cst_12 [1, 2] : vector<1x1x8xf32> to vector<1xf32>
    %24 = vector.shape_cast %23 : vector<1xf32> to vector<1x1x1xf32>
    %25 = vector.extract %24[0, 0, 0] : f32 from vector<1x1x1xf32>
    %26 = vector.broadcast %25 : f32 to vector<1x8x128xf32>
    %c0_13 = arith.constant 0 : index
    %c0_14 = arith.constant 0 : index
    %c0_15 = arith.constant 0 : index
    %27 = vector.load %arg5[%c0_13, %c0_14, %c0_15] : memref<1x8x128xf32, #tpu.memory_space<vmem>>, vector<1x8x128xf32>
    tpu.vector_store %arg5[%c0_13, %c0_14, %c0_15], %26 {strides = array<i32>} : memref<1x8x128xf32, #tpu.memory_space<vmem>>, vector<1x8x128xf32>,
    return
  }
  func.func @transform_0(%arg0: i32) -> (i32, i32) {
    %c0_i32 = arith.constant 0 : i32
    %c0_i32_0 = arith.constant 0 : i32
    %c0_i32_1 = arith.constant 0 : i32
    return %c0_i32, %c0_i32_0 : i32, i32
  }
  func.func @transform_1(%arg0: i32) -> (i32, i32) {
    %c0_i32 = arith.constant 0 : i32
    %c0_i32_0 = arith.constant 0 : i32
    return %arg0, %c0_i32 : i32, i32
  }
  func.func @transform_2(%arg0: i32) -> (i32, i32) {
    %c0_i32 = arith.constant 0 : i32
    %c0_i32_0 = arith.constant 0 : i32
    return %arg0, %c0_i32 : i32, i32
  }
  func.func @transform_3(%arg0: i32) -> (i32, i32) {
    %c0_i32 = arith.constant 0 : i32
    %c0_i32_0 = arith.constant 0 : i32
    return %arg0, %c0_i32 : i32, i32
  }
  func.func @transform_4(%arg0: i32) -> (i32, i32, i32) {
    %c0_i32 = arith.constant 0 : i32
    %c0_i32_0 = arith.constant 0 : i32
    %c0_i32_1 = arith.constant 0 : i32
    return %arg0, %c0_i32, %c0_i32_0 : i32, i32, i32
  }
}

</mosaic_0001>

<bundles_post_ra>
// kernel: tpu_custom_call.1
= control target key start
LH: loop header
LB: loop body
LE: loop exit
PB: predicated region body
PF: predicated region fallthrough
CT: control target
= control target key end

     0   :  { %s1958_s0 = inlined_call_operand.vmem [shape: f32[256,8], index: 0, kind: input, shape index: {}]   ;;  %s1959_s1 = inlined_call_operand.vmem [shape: f32[1,256], index: 1, kind: input, shape index: {}]   ;;  %s1960_s2 = inlined_call_operand.vmem [shape: f32[1,256], index: 2, kind: input, shape index: {}]   ;;  %s1961_s3 = inlined_call_operand.vmem [shape: f32[1,8], index: 3, kind: input, shape index: {}]   ;;  %s1962_s4 = inlined_call_operand.hbm [shape: f32[1,8,128], index: 4, kind: output, shape index: {}]  }
   0x1   :  { %v39_v0 = vld [vmem:[%s1958_s0 + $0x80] sm:$0xff]  ;;  %v40_v1 = vld [vmem:[%s1958_s0 + $0x88] sm:$0xff]  ;;  %v41_v7 = vld [vmem:[%s1958_s0 + $0x90] sm:$0xff] }
   0x2   :  { %v23_v2 = vld [vmem:[%s1958_s0] sm:$0xff]  ;;  %v115_v3 = vand.u32 4294901760, %v39_v0  ;;  %v118_v4 = vand.u32 4294901760, %v40_v1  ;;  %v24_v5 = vld [vmem:[%s1958_s0 + $0x8] sm:$0xff]  ;;  %v42_v8 = vld [vmem:[%s1958_s0 + $0x98] sm:$0xff]  ;;  %v121_v10 = vand.u32 4294901760, %v41_v7 }
   0x3   :  { %v67_v6 = vand.u32 4294901760, %v23_v2  ;;  %v70_v9 = vand.u32 4294901760, %v24_v5  ;;  %v124_v11 = vand.u32 4294901760, %v42_v8  ;;  %v25_v12 = vld [vmem:[%s1958_s0 + $0x10] sm:$0xff]  ;;  %v26_v13 = vld [vmem:[%s1958_s0 + $0x18] sm:$0xff]  ;;  %v43_v18 = vld [vmem:[%s1958_s0 + $0xa0] sm:$0xff] }
   0x4   :  { %v1452_v14 = vpack.c.bf16 %v118_v4, %v115_v3  ;;  %v73_v16 = vand.u32 4294901760, %v25_v12  ;;  %v76_v17 = vand.u32 4294901760, %v26_v13  ;;  %v44_v19 = vld [vmem:[%s1958_s0 + $0xa8] sm:$0xff]  ;;  %v27_v23 = vld [vmem:[%s1958_s0 + $0x20] sm:$0xff]  ;;  %v1475_v26 = vsub.f32 %v41_v7, %v121_v10  ;;  %v45_v38 = vld [vmem:[%s1958_s0 + $0xb0] sm:$0xff] }
   0x5   :  { %v1454_v15 = vsub.f32 %v23_v2, %v67_v6  ;;  %v1462_v20 = vpack.c.bf16 %v70_v9, %v67_v6  ;;  %v1464_v21 = vsub.f32 %v24_v5, %v70_v9  ;;  %v1466_v22 = vpack.c.bf16 %v124_v11, %v121_v10  ;;  %v28_v24 = vld [vmem:[%s1958_s0 + $0x28] sm:$0xff]  ;;  %v46_v43 = vld [vmem:[%s1958_s0 + $0xb8] sm:$0xff]  ;;  %v29_v56 = vld [vmem:[%s1958_s0 + $0x30] sm:$0xff] }
   0x6   :  { %1182 = vmatprep.subr.bf16.mxu0 %v1452_v14  ;;  %v1477_v27 = vsub.f32 %v42_v8, %v124_v11  ;;  %v1479_v28 = vpack.c.bf16 %v76_v17, %v73_v16  ;;  %v1481_v29 = vsub.f32 %v25_v12, %v73_v16  ;;  %v127_v30 = vand.u32 4294901760, %v43_v18  ;;  %v30_v57 = vld [vmem:[%s1958_s0 + $0x38] sm:$0xff] }
   0x7   :  { %1184 = vmatpush3.bf16.msra.mxu0 %v1462_v20  ;;  %v130_v31 = vand.u32 4294901760, %v44_v19  ;;  %v1484_v32 = vsub.f32 %v39_v0, %v115_v3  ;;  %v1486_v33 = vsub.f32 %v40_v1, %v118_v4  ;;  %v79_v34 = vand.u32 4294901760, %v27_v23 }
   0x8   :  { %1186 = vmatprep.subr.bf16.mxu0 %v1466_v22  ;;  %v82_v35 = vand.u32 4294901760, %v28_v24  ;;  %v1979_v36 = vand.u32 4294901760, %v1454_v15  ;;  %v1977_v37 = vand.u32 4294901760, %v1464_v21  ;;  %v1494_v39 = vsub.f32 %v26_v13, %v76_v17 }
   0x9   :  { %v1496_v40 = vpack.c.bf16 %v130_v31, %v127_v30  ;;  %v1498_v41 = vsub.f32 %v43_v18, %v127_v30  ;;  %v1982_v42 = vand.u32 4294901760, %v1484_v32  ;;  %v1504_v44 = vsub.f32 %v44_v19, %v130_v31 }
   0xa   :  { %v1980_v45 = vand.u32 4294901760, %v1486_v33  ;;  %v1507_v46 = vpack.c.bf16 %v82_v35, %v79_v34  ;;  %v1509_v47 = vsub.f32 %v27_v23, %v79_v34  ;;  %v182_v49 = vsub.f32 %v1454_v15, %v1979_v36 }
   0xb   :  { %1188 = vmatpush3.bf16.msra.mxu0 %v1479_v28  ;;  %v294_v48 = vsub.f32 %v1484_v32, %v1982_v42  ;;  %v189_v50 = vsub.f32 %v1464_v21, %v1977_v37  ;;  %v133_v51 = vand.u32 4294901760, %v45_v38  ;;  %v136_v53 = vand.u32 4294901760, %v46_v43 }
   0xc   :  { %1190 = vmatprep.subr.bf16.mxu0 %v1496_v40  ;;  %v301_v52 = vsub.f32 %v1486_v33, %v1980_v45  ;;  %v1976_v54 = vand.u32 4294901760, %v1475_v26  ;;  %v1975_v55 = vand.u32 4294901760, %v1477_v27  ;;  %v1533_v59 = vsub.f32 %v28_v24, %v82_v35 }
   0xd   :  { %v295_v58 = vand.u32 4294901760, %v294_v48  ;;  %v183_v60 = vand.u32 4294901760, %v182_v49  ;;  %v190_v61 = vand.u32 4294901760, %v189_v50  ;;  %v1535_v63 = vpack.c.bf16 %v136_v53, %v133_v51 }
   0xe   :  { %v302_v62 = vand.u32 4294901760, %v301_v52  ;;  %v1537_v0 = vsub.f32 %v45_v38, %v133_v51  ;;  %v308_v1 = vsub.f32 %v1475_v26, %v1976_v54 }
   0xf   :  { %9 = vsyncpa [#allocation3], 0  ;;  %1192 = vmatpush3.bf16.msra.mxu0 %v1507_v46  ;;  %v1215_v2 = vpack.c.bf16 %v190_v61, %v183_v60  ;;  %v315_v3 = vsub.f32 %v1477_v27, %v1975_v55  ;;  %v85_v4 = vand.u32 4294901760, %v29_v56  ;;  %v88_v5 = vand.u32 4294901760, %v30_v57  ;;  %v47_v6 = vld [vmem:[%s1958_s0 + $0xc0] sm:$0xff]  ;;  %v48_v7 = vld [vmem:[%s1958_s0 + $0xc8] sm:$0xff] }
  0x10   :  { %v1213_v8 = vpack.c.bf16 %v302_v62, %v295_v58  ;;  %1194 = vmatprep.subr.bf16.mxu0 %v1535_v63  ;;  %v309_v9 = vand.u32 4294901760, %v308_v1  ;;  %v1972_v10 = vand.u32 4294901760, %v1481_v29  ;;  %v1970_v11 = vand.u32 4294901760, %v1494_v39  ;;  %v31_v12 = vld [vmem:[%s1958_s0 + $0x40] sm:$0xff]  ;;  %v32_v31 = vld [vmem:[%s1958_s0 + $0x48] sm:$0xff]  ;;  %v50_v60 = vld [vmem:[%s1958_s0 + $0xd8] sm:$0xff] }
  0x11   :  { %v1558_v13 = vsub.f32 %v46_v43, %v136_v53  ;;  %v316_v16 = vand.u32 4294901760, %v315_v3  ;;  %v1560_v17 = vpack.c.bf16 %v88_v5, %v85_v4  ;;  %v1562_v18 = vsub.f32 %v29_v56, %v85_v4  ;;  %v33_v3 = vld [vmem:[%s1958_s0 + $0x50] sm:$0xff]  ;;  %s1402_s30 = smov [#allocation2]  }
  0x12   :  { %1214 = vmatprep.subr.bf16.mxu1 %v1213_v8  ;;  %v196_v19 = vsub.f32 %v1481_v29, %v1972_v10  ;;  %v203_v23 = vsub.f32 %v1494_v39, %v1970_v11  ;;  %v139_v24 = vand.u32 4294901760, %v47_v6  ;;  %v142_v30 = vand.u32 4294901760, %v48_v7 }
  0x13   :  { %1216 = vmatpush3.bf16.msra.mxu1 %v1215_v2  ;;  %v1217_v34 = vpack.c.bf16 %v316_v16, %v309_v9  ;;  %1196 = vmatpush3.bf16.msra.mxu0 %v1560_v17  ;;  %v1969_v35 = vand.u32 4294901760, %v1498_v41  ;;  %v1967_v38 = vand.u32 4294901760, %v1504_v44  ;;  %v91_v43 = vand.u32 4294901760, %v31_v12 }
  0x14   :  { %v1576_v48 = vsub.f32 %v30_v57, %v88_v5  ;;  %v197_v49 = vand.u32 4294901760, %v196_v19  ;;  %v204_v50 = vand.u32 4294901760, %v203_v23  ;;  %v1578_v51 = vpack.c.bf16 %v142_v30, %v139_v24  ;;  %v49_v57 = vld [vmem:[%s1958_s0 + $0xd0] sm:$0xff]  ;;  %v34_v23 = vld [vmem:[%s1958_s0 + $0x58] sm:$0xff] }
  0x15   :  { %1218 = vmatprep.subr.bf16.mxu1 %v1217_v34  ;;  %v1580_v52 = vsub.f32 %v47_v6, %v139_v24  ;;  %v322_v53 = vsub.f32 %v1498_v41, %v1969_v35  ;;  %v329_v56 = vsub.f32 %v1504_v44, %v1967_v38  ;;  %v94_v58 = vand.u32 4294901760, %v32_v31 }
  0x16   :  { %v1219_v61 = vpack.c.bf16 %v204_v50, %v197_v49  ;;  %1198 = vmatprep.subr.bf16.mxu0 %v1578_v51  ;;  %v1595_v62 = vsub.f32 %v48_v7, %v142_v30  ;;  %v1966_v1 = vand.u32 4294901760, %v1509_v47  ;;  %v1965_v2 = vand.u32 4294901760, %v1533_v59 }
  0x17   :  { %v323_v4 = vand.u32 4294901760, %v322_v53  ;;  %v330_v5 = vand.u32 4294901760, %v329_v56  ;;  %v1602_v6 = vpack.c.bf16 %v94_v58, %v91_v43  ;;  %v1604_v8 = vsub.f32 %v31_v12, %v91_v43 }
  0x18   :  { %1220 = vmatpush3.bf16.msra.mxu1 %v1219_v61  ;;  %v210_v7 = vsub.f32 %v1509_v47, %v1966_v1  ;;  %v217_v9 = vsub.f32 %v1533_v59, %v1965_v2  ;;  %v145_v16 = vand.u32 4294901760, %v49_v57  ;;  %v148_v19 = vand.u32 4294901760, %v50_v60 }
  0x19   :  { %v1221_v24 = vpack.c.bf16 %v330_v5, %v323_v4  ;;  %1200 = vmatpush3.bf16.msra.mxu0 %v1602_v6  ;;  %v1964_v12 = vand.u32 4294901760, %v1537_v0  ;;  %v1963_v30 = vand.u32 4294901760, %v1558_v13  ;;  %v97_v34 = vand.u32 4294901760, %v33_v3 }
  0x1a   :  { %v1618_v43 = vsub.f32 %v32_v31, %v94_v58  ;;  %v211_v49 = vand.u32 4294901760, %v210_v7  ;;  %v218_v50 = vand.u32 4294901760, %v217_v9  ;;  %v1620_v53 = vpack.c.bf16 %v148_v19, %v145_v16  ;;  %v51_v31 = vld [vmem:[%s1958_s0 + $0xe0] sm:$0xff]  ;;  %v52_v58 = vld [vmem:[%s1958_s0 + $0xe8] sm:$0xff] }
  0x1b   :  { %1222 = vmatprep.subr.bf16.mxu1 %v1221_v24  ;;  %v1622_v56 = vsub.f32 %v49_v57, %v145_v16  ;;  %v336_v61 = vsub.f32 %v1537_v0, %v1964_v12  ;;  %v343_v4 = vsub.f32 %v1558_v13, %v1963_v30  ;;  %v100_v5 = vand.u32 4294901760, %v34_v23  ;;  %v35_v24 = vld [vmem:[%s1958_s0 + $0x60] sm:$0xff] }
  0x1c   :  { %2010 = vst [vmem:[#allocation5_spill] sm:$0xff] %v1620_v53  ;;  %v1223_v7 = vpack.c.bf16 %v218_v50, %v211_v49  ;;  %1202 = vmatprep.subr.bf16.mxu0 %v1620_v53  ;;  %v1637_v57 = vsub.f32 %v50_v60, %v148_v19  ;;  %v1968_v9 = vand.u32 4294901760, %v1562_v18  ;;  %v1971_v16 = vand.u32 4294901760, %v1576_v48 }
  0x1d   :  { %v337_v30 = vand.u32 4294901760, %v336_v61  ;;  %v344_v12 = vand.u32 4294901760, %v343_v4  ;;  %v1644_v2 = vpack.c.bf16 %v100_v5, %v97_v34  ;;  %v1646_v1 = vsub.f32 %v33_v3, %v97_v34  ;;  %v36_v61 = vld [vmem:[%s1958_s0 + $0x68] sm:$0xff] }
  0x1e   :  { %1224 = vmatpush3.bf16.msra.mxu1 %v1223_v7  ;;  %v224_v60 = vsub.f32 %v1562_v18, %v1968_v9  ;;  %v231_v19 = vsub.f32 %v1576_v48, %v1971_v16  ;;  %v151_v49 = vand.u32 4294901760, %v51_v31  ;;  %v154_v50 = vand.u32 4294901760, %v52_v58 }
  0x1f   :  { %2011 = vst [vmem:[#allocation6_spill] sm:$0xff] %v1644_v2  ;;  %v1225_v4 = vpack.c.bf16 %v344_v12, %v337_v30  ;;  %1204 = vmatpush3.bf16.msra.mxu0 %v1644_v2  ;;  %v1974_v3 = vand.u32 4294901760, %v1580_v52  ;;  %v1973_v34 = vand.u32 4294901760, %v1595_v62  ;;  %v103_v7 = vand.u32 4294901760, %v35_v24 }
  0x20   :  { %v1660_v38 = vsub.f32 %v34_v23, %v100_v5  ;;  %v225_v9 = vand.u32 4294901760, %v224_v60  ;;  %v232_v35 = vand.u32 4294901760, %v231_v19  ;;  %v1662_v11 = vpack.c.bf16 %v154_v50, %v151_v49  ;;  %v53_v23 = vld [vmem:[%s1958_s0 + $0xf0] sm:$0xff]  ;;  %v54_v5 = vld [vmem:[%s1958_s0 + $0xf8] sm:$0xff] }
  0x21   :  { %1226 = vmatprep.subr.bf16.mxu1 %v1225_v4  ;;  %v1664_v16 = vsub.f32 %v51_v31, %v151_v49  ;;  %v350_v12 = vsub.f32 %v1580_v52, %v1974_v3  ;;  %v357_v30 = vsub.f32 %v1595_v62, %v1973_v34  ;;  %v106_v10 = vand.u32 4294901760, %v36_v61  ;;  %v37_v4 = vld [vmem:[%s1958_s0 + $0x70] sm:$0xff] }
  0x22   :  { %2012 = vst [vmem:[#allocation7_spill] sm:$0xff] %v1662_v11  ;;  %v1227_v60 = vpack.c.bf16 %v232_v35, %v225_v9  ;;  %1206 = vmatprep.subr.bf16.mxu0 %v1662_v11  ;;  %v1679_v31 = vsub.f32 %v52_v58, %v154_v50  ;;  %v1978_v19 = vand.u32 4294901760, %v1604_v8  ;;  %v1981_v49 = vand.u32 4294901760, %v1618_v43 }
  0x23   :  { %v351_v34 = vand.u32 4294901760, %v350_v12  ;;  %v358_v3 = vand.u32 4294901760, %v357_v30  ;;  %v1686_v55 = vpack.c.bf16 %v106_v10, %v103_v7  ;;  %v1688_v54 = vsub.f32 %v35_v24, %v103_v7  ;;  %v38_v12 = vld [vmem:[%s1958_s0 + $0x78] sm:$0xff] }
  0x24   :  { %1228 = vmatpush3.bf16.msra.mxu1 %v1227_v60  ;;  %v238_v35 = vsub.f32 %v1604_v8, %v1978_v19  ;;  %v245_v58 = vsub.f32 %v1618_v43, %v1981_v49  ;;  %v157_v9 = vand.u32 4294901760, %v53_v23  ;;  %v160_v50 = vand.u32 4294901760, %v54_v5 }
  0x25   :  { %2013 = vst [vmem:[#allocation8_spill] sm:$0xff] %v1686_v55  ;;  %v1229_v30 = vpack.c.bf16 %v358_v3, %v351_v34  ;;  %1208 = vmatpush3.bf16.msra.mxu0 %v1686_v55  ;;  %v1984_v24 = vand.u32 4294901760, %v1622_v56  ;;  %v1983_v7 = vand.u32 4294901760, %v1637_v57  ;;  %v109_v60 = vand.u32 4294901760, %v37_v4 }
  0x26   :  { %v1702_v37 = vsub.f32 %v36_v61, %v106_v10  ;;  %v239_v19 = vand.u32 4294901760, %v238_v35  ;;  %v246_v36 = vand.u32 4294901760, %v245_v58  ;;  %v1704_v45 = vpack.c.bf16 %v160_v50, %v157_v9  ;;  %v18_v10 = vld [vmem:[%s1959_s1] sm:$0x3] }
  0x27   :  { %1230 = vmatprep.subr.bf16.mxu1 %v1229_v30  ;;  %v1706_v49 = vsub.f32 %v53_v23, %v157_v9  ;;  %v364_v3 = vsub.f32 %v1622_v56, %v1984_v24  ;;  %v371_v34 = vsub.f32 %v1637_v57, %v1983_v7  ;;  %v112_v42 = vand.u32 4294901760, %v38_v12  ;;  %v19_v61 = vld [vmem:[%s1960_s2] sm:$0x3] }
  0x28   :  { %2014 = vst [vmem:[#allocation9_spill] sm:$0xff] %v1704_v45  ;;  %v1231_v35 = vpack.c.bf16 %v246_v36, %v239_v19  ;;  %1210 = vmatprep.subr.bf16.mxu0 %v1704_v45  ;;  %v1721_v23 = vsub.f32 %v54_v5, %v160_v50  ;;  %v1989_v58 = vand.u32 4294901760, %v1646_v1  ;;  %v1992_v9 = vand.u32 4294901760, %v1660_v38 }
  0x29   :  { %2015 = vst [vmem:[#allocation10_spill] sm:$0xff] %v1706_v49  ;;  %v365_v30 = vand.u32 4294901760, %v364_v3  ;;  %v372_v7 = vand.u32 4294901760, %v371_v34  ;;  %v1725_v24 = vpack.c.bf16 %v112_v42, %v109_v60  ;;  %v1727_v25 = vsub.f32 %v37_v4, %v109_v60 }
  0x2a   :  { %2016 = vst [vmem:[#allocation11_spill] sm:$0xff] %v1721_v23  ;;  %1232 = vmatpush3.bf16.msra.mxu1 %v1231_v35  ;;  %v252_v55 = vsub.f32 %v1646_v1, %v1989_v58  ;;  %v259_v36 = vsub.f32 %v1660_v38, %v1992_v9  ;;  %v21_v5 = vsub.f32 %v18_v10, %v19_v61  ;;  %v2018_v19 = vlaneseq }
  0x2b   :  { %2017 = vst [vmem:[#allocation12_spill] sm:$0xff] %v1725_v24  ;;  %v1233_v45 = vpack.c.bf16 %v372_v7, %v365_v30  ;;  %1212 = vmatpush3.bf16.msra.mxu0 %v1725_v24  ;;  %v1995_v3 = vand.u32 4294901760, %v1664_v16  ;;  %v2000_v4 = vand.u32 4294901760, %v1679_v31  ;;  %v1245_v60 = vpack.c.bf16 %v1486_v33, %v1484_v32 }
  0x2c   :  { %v57_v50 = vshrl.u32 %v2018_v19, 7  ;;  %v253_v34 = vand.u32 4294901760, %v252_v55  ;;  %v260_v35 = vand.u32 4294901760, %v259_v36  ;;  %v22_v58 = vmul.f32 %v21_v5, %v21_v5 }
  0x2d   :  { %1234 = vmatprep.subr.bf16.mxu1 %v1233_v45  ;;  %v378_v10 = vsub.f32 %v1664_v16, %v1995_v3  ;;  %v385_v7 = vsub.f32 %v1679_v31, %v2000_v4  ;;  %1246 = vmatprep.subr.bf16.mxu0 %v1245_v60  ;;  %v1999_v30 = vand.u32 4294901760, %v1688_v54  ;;  %v1748_v19 = vsub.f32 %v38_v12, %v112_v42 }
  0x2e   :  { %v62_v11 = vsub.s32 1, %v57_v50  ;;  %v58_v61 = vsub.s32 0, %v57_v50  ;;  %v1235_v9 = vpack.c.bf16 %v260_v35, %v253_v34  ;;  %v1998_v36 = vand.u32 4294901760, %v1702_v37 }
  0x2f   :  { %v379_v5 = vand.u32 4294901760, %v378_v10  ;;  %v386_v45 = vand.u32 4294901760, %v385_v7  ;;  %v266_v3 = vsub.f32 %v1688_v54, %v1999_v30  ;;  %v391_v42 = vand.u32 4294901760, %v1706_v49 }
  0x30   :  { %v63_v55 = vrot.slane %v22_v58, %v62_v11  ;;  %v59_v24 = vrot.slane %v22_v58, %v58_v61  ;;  %1236 = vmatpush3.bf16.msra.mxu1 %v1235_v9  ;;  %v273_v50 = vsub.f32 %v1702_v37, %v1998_v36  ;;  %v398_v11 = vand.u32 4294901760, %v1721_v23 }
  0x31   :  { %v1237_v12 = vpack.c.bf16 %v386_v45, %v379_v5  ;;  %v267_v34 = vand.u32 4294901760, %v266_v3  ;;  %v392_v10 = vsub.f32 %v1706_v49, %v391_v42  ;;  %v279_v61 = vand.u32 4294901760, %v1727_v25 }
  0x32   :  { %v1754_v2 = vand.u32 4294901760, %v63_v55  ;;  %v1761_v60 = vand.u32 4294901760, %v59_v24  ;;  %v274_v35 = vand.u32 4294901760, %v273_v50  ;;  %v399_v9 = vsub.f32 %v1721_v23, %v398_v11 }
  0x33   :  { %1238 = vmatprep.subr.bf16.mxu1 %v1237_v12  ;;  %v286_v5 = vand.u32 4294901760, %v1748_v19  ;;  %v393_v3 = vand.u32 4294901760, %v392_v10  ;;  %v280_v50 = vsub.f32 %v1727_v25, %v279_v61  ;;  %v1249_v10 = vpack.c.bf16 %v1477_v27, %v1475_v26 }
  0x34   :  { %2019 = vst [vmem:[#allocation13_spill] sm:$0xff] %v1754_v2  ;;  %v163_v58 = vsub.f32 %v63_v55, %v1754_v2  ;;  %403 = vmatprep.mubr.f32.mxu1 %v1754_v2  ;;  %v1768_v7 = vsub.f32 %v59_v24, %v1761_v60  ;;  %v1239_v36 = vpack.c.bf16 %v274_v35, %v267_v34  ;;  %v400_v30 = vand.u32 4294901760, %v399_v9 }
  0x35   :  { %v287_v4 = vsub.f32 %v1748_v19, %v286_v5  ;;  %v281_v2 = vand.u32 4294901760, %v280_v50  ;;  %v1247_v34 = vpack.c.bf16 %v1464_v21, %v1454_v15  ;;  %v2023_v50 = vand.u32 4294901760, %v1454_v15 }
  0x36   :  { %2020 = vst [vmem:[#allocation14_spill] sm:$0xff] %v1768_v7  ;;  %v164_v45 = vand.u32 4294901760, %v163_v58  ;;  %v2007_v55 = vand.u32 4294901760, %v1768_v7  ;;  %1240 = vmatpush3.bf16.msra.mxu1 %v1239_v36  ;;  %v1241_v12 = vpack.c.bf16 %v400_v30, %v393_v3  ;;  %v1251_v30 = vpack.c.bf16 %v1494_v39, %v1481_v29 }
  0x37   :  { %v288_v49 = vand.u32 4294901760, %v287_v4  ;;  %v1253_v36 = vpack.c.bf16 %v1504_v44, %v1498_v41  ;;  %v2021_v3 = vand.u32 4294901760, %v1484_v32  ;;  %v2030_v15 = vand.u32 4294901760, %v1504_v44 }
  0x38   :  { %v165_v23 = vsub.f32 %v163_v58, %v164_v45  ;;  %v171_v24 = vsub.f32 %v1768_v7, %v2007_v55  ;;  %1242 = vmatprep.subr.bf16.mxu1 %v1241_v12  ;;  %v2024_v12 = vand.u32 4294901760, %v1464_v21  ;;  %v2027_v55 = vand.u32 4294901760, %v1481_v29 }
  0x39   :  { %v1243_v9 = vpack.c.bf16 %v288_v49, %v281_v2  ;;  %v2025_v2 = vand.u32 4294901760, %v1475_v26  ;;  %v2028_v7 = vand.u32 4294901760, %v1494_v39  ;;  %v2031_v26 = vand.u32 4294901760, %v1509_v47 }
  0x3a   :  { %v166_v53 = vand.u32 4294901760, %v165_v23  ;;  %v172_v35 = vand.u32 4294901760, %v171_v24  ;;  %v2022_v23 = vand.u32 4294901760, %v1486_v33  ;;  %v1311_v24 = vpack.c.bf16 %v2024_v12, %v2023_v50 }
  0x3b   :  { %1244 = vmatpush3.bf16.msra.mxu1 %v1243_v9  ;;  %v1802_v32 = vpack.c.bf16 %v2028_v7, %v2027_v55  ;;  %v2029_v33 = vand.u32 4294901760, %v1498_v41  ;;  %v2033_v29 = vand.u32 4294901760, %v1537_v0  ;;  %v2034_v39 = vand.u32 4294901760, %v1558_v13 }
  0x3c   :  { %167 = vmatprep.mubr.f32.mxu0 %v166_v53  ;;  %v1309_v4 = vpack.c.bf16 %v2022_v23, %v2021_v3  ;;  %v2026_v53 = vand.u32 4294901760, %v1477_v27  ;;  %1278 = vmatprep.subr.bf16.mxu1 %v1452_v14  ;;  %v2032_v27 = vand.u32 4294901760, %v1533_v59  ;;  %v2035_v41 = vand.u32 4294901760, %v1562_v18 }
  0x3d   :  { %173 = vmatmul.mubr.f32.vlgmr.msra.gmra.mrb[0].mxu0 %v172_v35  ;;  %v1809_v21 = vpack.c.bf16 %v2030_v15, %v2029_v33  ;;  %v1821_v7 = vpack.c.bf16 %v2034_v39, %v2033_v29  ;;  %v2036_v44 = vand.u32 4294901760, %v1576_v48  ;;  %v2038_v9 = vand.u32 4294901760, %v1595_v62 }
  0x3e   :  { %v1313_v49 = vpack.c.bf16 %v2026_v53, %v2025_v2  ;;  %1248 = vmatpush3.bf16.msra.mxu0 %v1247_v34  ;;  %v1815_v35 = vpack.c.bf16 %v2032_v27, %v2031_v26  ;;  %540 = vmatprep.mubr.f32.mxu0 %v163_v58  ;;  %v2037_v34 = vand.u32 4294901760, %v1580_v52  ;;  %v2039_v23 = vand.u32 4294901760, %v1604_v8 }
  0x3f   :  { %1250 = vmatprep.subr.bf16.mxu0 %v1249_v10  ;;  %v1827_v55 = vpack.c.bf16 %v2036_v44, %v2035_v41  ;;  %v2040_v50 = vand.u32 4294901760, %v1618_v43  ;;  %405 = vmatmul.mubr.f32.vlgmr.msra.gmra.mrb[0].mxu1 %v1761_v60  ;;  %v2041_v58 = vand.u32 4294901760, %v1622_v56  ;;  %v2042_v10 = vand.u32 4294901760, %v1637_v57 }
  0x40   :  { %v1833_v3 = vpack.c.bf16 %v2038_v9, %v2037_v34  ;;  %v2043_v53 = vand.u32 4294901760, %v1646_v1  ;;  %v2044_v33 = vand.u32 4294901760, %v1660_v38  ;;  %v2045_v26 = vand.u32 4294901760, %v1664_v16  ;;  %1280 = vmatpush3.bf16.msra.mxu1 %v1462_v20  ;;  %647 = vmatprep.mubr.f32.mxu1 %v164_v45 }
  0x41   :  { %v1839_v12 = vpack.c.bf16 %v2040_v50, %v2039_v23  ;;  %v1846_v2 = vpack.c.bf16 %v2042_v10, %v2041_v58  ;;  %v2046_v27 = vand.u32 4294901760, %v1679_v31  ;;  %v2047_v39 = vand.u32 4294901760, %v1688_v54  ;;  %1282 = vmatprep.subr.bf16.mxu1 %v1466_v22 }
  0x42   :  { %v1852_v15 = vpack.c.bf16 %v2044_v33, %v2043_v53  ;;  %v2048_v41 = vand.u32 4294901760, %v1702_v37  ;;  %v1867_v34 = vpack.c.bf16 %v398_v11, %v391_v42  ;;  %v1869_v9 = vpack.c.bf16 %v286_v5, %v279_v61  ;;  %1252 = vmatpush3.bf16.msra.mxu0 %v1251_v30 }
  0x43   :  { %v1858_v29 = vpack.c.bf16 %v2046_v27, %v2045_v26  ;;  %v1255_v23 = vpack.c.bf16 %v1533_v59, %v1509_v47  ;;  %1254 = vmatprep.subr.bf16.mxu0 %v1253_v36  ;;  %v1257_v50 = vpack.c.bf16 %v1558_v13, %v1537_v0  ;;  %v1259_v45 = vpack.c.bf16 %v1576_v48, %v1562_v18  ;;  %v2049_v48 = vld [vmem:[#allocation5_spill] sm:$0xff] }
  0x44   :  { %v1864_v44 = vpack.c.bf16 %v2048_v41, %v2047_v39  ;;  %1284 = vmatpush3.bf16.msra.mxu1 %v1479_v28  ;;  %v1261_v42 = vpack.c.bf16 %v1595_v62, %v1580_v52  ;;  %v1263_v47 = vpack.c.bf16 %v1618_v43, %v1604_v8  ;;  %v1265_v59 = vpack.c.bf16 %v1637_v57, %v1622_v56  ;;  %v2050_v52 = vld [vmem:[#allocation10_spill] sm:$0xff]  ;;  %v2051_v62 = vld [vmem:[#allocation11_spill] sm:$0xff]  ;;  %v2054_v56 = vld [vmem:[#allocation8_spill] sm:$0xff] }
  0x45   :  { %1286 = vmatprep.subr.bf16.mxu1 %v1496_v40  ;;  %v1267_v0 = vpack.c.bf16 %v1660_v38, %v1646_v1  ;;  %v1269_v13 = vpack.c.bf16 %v1679_v31, %v1664_v16  ;;  %v1271_v18 = vpack.c.bf16 %v1702_v37, %v1688_v54  ;;  %v1273_v8 = vpack.c.bf16 %v2051_v62, %v2050_v52  ;;  %v2052_v43 = vld [vmem:[#allocation6_spill] sm:$0xff]  ;;  %v2053_v1 = vld [vmem:[#allocation7_spill] sm:$0xff]  ;;  %v2055_v57 = vld [vmem:[#allocation9_spill] sm:$0xff] }
  0x46   :  { %1256 = vmatpush3.bf16.msra.mxu0 %v1255_v23  ;;  %v1275_v38 = vpack.c.bf16 %v1748_v19, %v1727_v25  ;;  %v2056_v37 = vld [vmem:[#allocation14_spill] sm:$0xff]  ;;  %v2057_v54 = vld [vmem:[#allocation12_spill] sm:$0xff]  ;;  %v2058_v16 = vld [vmem:[#allocation13_spill] sm:$0xff]  ;;  %vm944_vm2 = vcmask 57344  }
  0x47   :  { %1258 = vmatprep.subr.bf16.mxu0 %v1257_v50  ;;  %v2059_v25 = vand.u32 4294901760, %v2056_v37 }
  0x48   :  { %1288 = vmatpush3.bf16.msra.mxu1 %v1507_v46 }
  0x49   :  { %1290 = vmatprep.subr.bf16.mxu1 %v1535_v63 }
  0x4a   :  { %1260 = vmatpush3.bf16.msra.mxu0 %v1259_v45 }
  0x4b   :  { %1262 = vmatprep.subr.bf16.mxu0 %v1261_v42 }
  0x4c   :  { %1292 = vmatpush3.bf16.msra.mxu1 %v1560_v17 }
  0x4d   :  { %1294 = vmatprep.subr.bf16.mxu1 %v1578_v51 }
  0x4e   :  { %1264 = vmatpush3.bf16.msra.mxu0 %v1263_v47 }
  0x4f   :  { %1266 = vmatprep.subr.bf16.mxu0 %v1265_v59 }
  0x50   :  { %1296 = vmatpush3.bf16.msra.mxu1 %v1602_v6 }
  0x51   :  { %1298 = vmatprep.subr.bf16.mxu1 %v2049_v48 }
  0x52   :  { %1268 = vmatpush3.bf16.msra.mxu0 %v1267_v0 }
  0x53   :  { %1270 = vmatprep.subr.bf16.mxu0 %v1269_v13 }
  0x54   :  { %1300 = vmatpush3.bf16.msra.mxu1 %v2052_v43 }
  0x55   :  { %1302 = vmatprep.subr.bf16.mxu1 %v2053_v1 }
  0x56   :  { %1272 = vmatpush3.bf16.msra.mxu0 %v1271_v18 }
  0x57   :  { %1274 = vmatprep.subr.bf16.mxu0 %v1273_v8 }
  0x58   :  { %1304 = vmatpush3.bf16.msra.mxu1 %v2054_v56 }
  0x59   :  { %1306 = vmatprep.subr.bf16.mxu1 %v2055_v57 }
  0x5a   :  { %1276 = vmatpush3.bf16.msra.mxu0 %v1275_v38 }
  0x5b   :  { %1310 = vmatprep.subr.bf16.mxu0 %v1309_v4 }
  0x5c   :  { %1308 = vmatpush3.bf16.msra.mxu1 %v2057_v54 }
  0x5d   :  { %543 = vmatmul.mubr.f32.vlgmr.msra.gmra.mrb[2].mxu0 %v2056_v37  ;;  %1342 = vmatprep.subr.bf16.mxu1 %v1452_v14 }
  0x5e   :  { %1312 = vmatpush3.bf16.msra.mxu0 %v1311_v24  ;;  %817 = vmatprep.mubr.f32.mxu0 %v2058_v16 }
  0x5f   :  { %1314 = vmatprep.subr.bf16.mxu0 %v1313_v49  ;;  %651 = vmatmul.mubr.f32.vlgmr.msra.gmra.mrb[2].mxu1 %v2059_v25 }
  0x60   :  { %1344 = vmatpush3.bf16.msra.mxu1 %v1462_v20  ;;  %921 = vmatprep.mubr.f32.mxu1 %v2058_v16 }
  0x61   :  { %1346 = vmatprep.subr.bf16.mxu1 %v1466_v22 }
  0x62   :  { %1316 = vmatpush3.bf16.msra.mxu0 %v1802_v32 }
  0x63   :  { %1318 = vmatprep.subr.bf16.mxu0 %v1809_v21 }
  0x64   :  { %1348 = vmatpush3.bf16.msra.mxu1 %v1479_v28 }
  0x65   :  { %1350 = vmatprep.subr.bf16.mxu1 %v1496_v40 }
  0x66   :  { %1320 = vmatpush3.bf16.msra.mxu0 %v1815_v35 }
  0x67   :  { %1322 = vmatprep.subr.bf16.mxu0 %v1821_v7 }
  0x68   :  { %1352 = vmatpush3.bf16.msra.mxu1 %v1507_v46 }
  0x69   :  { %1354 = vmatprep.subr.bf16.mxu1 %v1535_v63 }
  0x6a   :  { %1324 = vmatpush3.bf16.msra.mxu0 %v1827_v55 }
  0x6b   :  { %1326 = vmatprep.subr.bf16.mxu0 %v1833_v3 }
  0x6c   :  { %1356 = vmatpush3.bf16.msra.mxu1 %v1560_v17 }
  0x6d   :  { %1358 = vmatprep.subr.bf16.mxu1 %v1578_v51 }
  0x6e   :  { %1328 = vmatpush3.bf16.msra.mxu0 %v1839_v12 }
  0x6f   :  { %1330 = vmatprep.subr.bf16.mxu0 %v1846_v2  ;;  %v20_v2 = vld [vmem:[%s1961_s3] sm:$0x1]  ;;  %s963_s3 = sshll.u32 %s1402_s30, 4  ;;  %s964_s3 = int_to_ptr.vmem [resolvable:$true] %s963_s3 }
  0x70   :  { %1360 = vmatpush3.bf16.msra.mxu1 %v1602_v6  ;;  %v939_v33 = vsub.f32 1.0, %v20_v2  ;;  %s1378_s6 = scalar_lea.vmem %s964_s3, 128  ;;  %p1383_p1 = scmp.lt.s32.totalorder %s964_s3, %s964_s3 }
  0x71   :  { %1362 = vmatprep.subr.bf16.mxu1 %v2049_v48  ;;  %p1379_p0 = scmp.ne.s32.totalorder %s964_s3, %s1378_s6  ;;  %p1384_p2 = scmp.lt.s32.totalorder %s1378_s6, %s1378_s6 }
  0x72   :  { %1332 = vmatpush3.bf16.msra.mxu0 %v1852_v15 }
  0x73   :  { %1334 = vmatprep.subr.bf16.mxu0 %v1858_v29  ;;  %p1385_p3 = por %p1384_p2, %p1383_p1 }
  0x74   :  { %1364 = vmatpush3.bf16.msra.mxu1 %v2052_v43 }
  0x75   :  { %1366 = vmatprep.subr.bf16.mxu1 %v2053_v1  ;;  %p1386_p4 = pnand %p1385_p3, %p1379_p0 }
  0x76   :  { %1336 = vmatpush3.bf16.msra.mxu0 %v1864_v44 }
  0x77   :  { %1338 = vmatprep.subr.bf16.mxu0 %v1867_v34 }
  0x78   :  { %1368 = vmatpush3.bf16.msra.mxu1 %v2054_v56 }
  0x79   :  { %1370 = vmatprep.subr.bf16.mxu1 %v2055_v57 }
  0x7a   :  { %1340 = vmatpush3.bf16.msra.mxu0 %v1869_v9 }
  0x7c   :  { %1372 = vmatpush3.bf16.msra.mxu1 %v2057_v54 }
  0x7d   :  { %819 = vmatmul.mubr.f32.vlgmr.msra.gmra.mrb[4].mxu0 %v1761_v60 }
  0x7f   :  { %923 = vmatmul.mubr.f32.vlgmr.msra.gmra.mrb[4].mxu1 %v1761_v60 }
 0x110   :  { %v1003_v14 = vpop.f32.mrb[0].mxu0 }
 0x111   :  { %v1004_v20 = vpop.f32.mrb[1].mxu0 }
 0x112   :  { %v1005_v22 = vadd.f32 %v1004_v20, %v1003_v14  ;;  %v1038_v28 = vpop.f32.mrb[0].mxu1 }
 0x113   :  { %v1039_v40 = vpop.f32.mrb[1].mxu1 }
 0x114   :  { %v1040_v46 = vadd.f32 %v1039_v40, %v1038_v28 }
 0x116   :  { %v407_v63 = vadd.f32 %v1040_v46, %v1005_v22 }
 0x130   :  { %v1073_v17 = vpop.f32.mrb[2].mxu0 }
 0x131   :  { %v1074_v51 = vpop.f32.mrb[3].mxu0 }
 0x132   :  { %v1075_v6 = vadd.f32 %v1074_v51, %v1073_v17  ;;  %v1108_v31 = vpop.f32.mrb[2].mxu1 }
 0x133   :  { %v1109_v11 = vpop.f32.mrb[3].mxu1 }
 0x134   :  { %v545_v19 = vadd.f32 %v1075_v6, %v407_v63  ;;  %v1110_v61 = vadd.f32 %v1109_v11, %v1108_v31 }
 0x136   :  { %v653_v5 = vadd.f32 %v1110_v61, %v545_v19 }
 0x150   :  { %v1143_v30 = vpop.f32.mrb[4].mxu0 }
 0x151   :  { %v1144_v36 = vpop.f32.mrb[5].mxu0 }
 0x152   :  { %v1145_v4 = vadd.f32 %v1144_v36, %v1143_v30  ;;  %v1178_v24 = vpop.f32.mrb[4].mxu1 }
 0x153   :  { %v1179_v49 = vpop.f32.mrb[5].mxu1 }
 0x154   :  { %v821_v60 = vadd.f32 %v1145_v4, %v653_v5  ;;  %v1180_v32 = vadd.f32 %v1179_v49, %v1178_v24 }
 0x156   :  { %v925_v21 = vadd.f32 %v1180_v32, %v821_v60 }
 0x158   :  { %v928_v35 = vadd.f32 1e-09, %v925_v21  ;;  %v938_v26 = vmul.f32 %v925_v21, %v20_v2 }
 0x15a   :  { %1376 = vrsqrt.f32 %v928_v35  ;;  %vm931_vm0 = vcmp.eq.f32.partialorder %v928_v35, inf  ;;  %v934_v3 = vand.u32 2147483648, %v928_v35  ;;  %vm933_vm1 = vcmp.eq.f32.partialorder %v928_v35, 0.0 }
 0x164   :  { %v1377_v7 = vpop.eup %1376 }
 0x165   :  { %v930_v55 = vmul.f32 %v1377_v7, %v928_v35 }
 0x167   :  { %v932_v12 = vsel %vm931_vm0, %v928_v35, %v930_v55 }
 0x168   :  { %v935_v58 = vsel %vm933_vm1, %v934_v3, %v932_v12 }
 0x169   :  { %v936_v10 = vsub.f32 0.5, %v935_v58 }
 0x16b   :  { %v937_v53 = vmax.f32 %v936_v10, 0.0 }
 0x16d   :  { %v940_v15 = vmul.f32 %v937_v53, %v937_v53 }
 0x16f   :  { %v941_v27 = vmul.f32 %v940_v15, %v939_v33 }
 0x171   :  { %v942_v29 = vadd.f32 %v941_v27, %v938_v26 }
 0x173   :  { %v943_v39 = vmul.f32 0.5, %v942_v29 }
 0x175   :  { %v945_v41 = vsel %vm944_vm2, %v943_v39, 0.0 }
 0x176   :  { %946 = vadd.xlane.f32.xlu0 %v945_v41 }
 0x203   :  { %v947_v44 = vpop.xlane.xlu0 %946 }
 0x204   :  { %v948_v34 = vrot.slane %v947_v44, 4 }
 0x206   :  { %v949_v9 = vadd.f32 %v948_v34, %v947_v44 }
 0x208   :  { %v950_v23 = vrot.slane %v949_v9, 2 }
 0x20a   :  { %v951_v50 = vadd.f32 %v950_v23, %v949_v9 }
 0x20c   :  { %v952_v45 = vrot.slane %v951_v50, 1 }
 0x20e   :  { %v953_v42 = vadd.f32 %v952_v45, %v951_v50 }
 0x210   :  { %1373 = vpush %v953_v42 }
 0x241   :  { %s1374_s5 = spop %1373 }
 0x242   :  { %v955_v47 = vstv %s1374_s5 }
 0x243   :  { %956 = vst [vmem:[#allocation2] sm:$0xff] %v955_v47 }
 0x244   :  { %1389 = shalt.err (!%p1386_p4)
}
 0x245   :  { %s1390_s9 = scalar_lea.hbm %s1962_s4, 128 }
 0x246   :  { %p1391_p5 = scmp.ne.s32.totalorder %s1962_s4, %s1390_s9  ;;  %p1394_p6 = scmp.lt.u32.totalorder %s1390_s9, %s1962_s4 }
 0x248   :  { %p1396_p7 = pnand %p1394_p6, %p1391_p5 }
 0x24a   :  { %1399 = shalt.err (!%p1396_p7)
}
 0x24b   :  { %966 = dma.vmem_to_hbm [thread:$0]  %s964_s3, 128, %s1962_s4, [#allocation3]  }
 0x24c   :  { %1400 = dma.done.wait [#allocation3], 128  }
 0x24d   :  { %1401 = vsyncadd [#allocation3], 4294967168 }
 0x24e   :  { %970 = vsyncpa [#allocation3], 1 }

</bundles_post_ra>
